<compile_context>
chip_gen: v5e
topology: v5e:2x2
jax: 0.10.0
libtpu: 0.0.40
codegen_flags: <defaults>
</compile_context>

<pallas_src>
import math

import jax
import jax.numpy as jnp
from jax.experimental import pallas as pl
from jax.experimental.pallas import tpu as pltpu


# ---------------------------------------------------------------------------
# Kernels
# ---------------------------------------------------------------------------
def _mlp_kernel_fused(x_ref, w1_ref, b1_ref, w2_ref, b2_ref, o_ref):
    """Resident-weights path (nk == 1): no accumulator round-trip."""
    h = jnp.dot(x_ref[...], w1_ref[...], preferred_element_type=jnp.float32)
    h = jnp.maximum(h + b1_ref[...].astype(jnp.float32), 0.0)
    out = jnp.dot(h.astype(w2_ref.dtype), w2_ref[...],
                  preferred_element_type=jnp.float32)
    o_ref[...] = (out + b2_ref[...].astype(jnp.float32)).astype(o_ref.dtype)


def _mlp_kernel_stream(x_ref, w1_ref, b1_ref, w2_ref, b2_ref, o_ref, acc_ref):
    """Streaming-weights path (nk > 1): accumulate hidden chunks in f32."""
    k = pl.program_id(1)
    h = jnp.dot(x_ref[...], w1_ref[...], preferred_element_type=jnp.float32)
    h = jnp.maximum(h + b1_ref[...].astype(jnp.float32), 0.0)
    part = jnp.dot(h.astype(w2_ref.dtype), w2_ref[...],
                   preferred_element_type=jnp.float32)

    @pl.when(k == 0)
    def _():
        acc_ref[...] = part          # no zero-fill store + reload

    @pl.when(k > 0)
    def _():
        acc_ref[...] += part

    @pl.when(k == pl.num_programs(1) - 1)
    def _():
        o_ref[...] = (acc_ref[...] + b2_ref[...].astype(jnp.float32)).astype(o_ref.dtype)


# ---------------------------------------------------------------------------
# Hardware / tiling helpers
# ---------------------------------------------------------------------------
def _vmem_capacity_bytes() -> int:
    try:
        cap = getattr(pltpu.get_tpu_info(), "vmem_capacity_bytes", None)
        if cap:
            return int(cap)
    except Exception:
        pass
    return 128 << 20  # v5e/v6e default


def _pipeline_mode_supported() -> bool:
    try:
        pl.BlockSpec((8, 128), lambda i: (0, 0), pipeline_mode=pl.Buffered(1))
        return True
    except Exception:
        return False


_HAS_PIPELINE_MODE = _pipeline_mode_supported()


def _sublane_for(dtype) -> int:
    return {4: 8, 2: 16, 1: 32}.get(jnp.dtype(dtype).itemsize, 8)


def _choose_tb(B: int, sublane: int, target: int) -> int:
    """Largest sublane-aligned divisor of B <= target; prefer 256/128 alignment
    (full MXU width) and >= 2 grid steps (pipelining / megacore sharding)."""
    upper = min(target, B)
    if B // 2 >= sublane:
        upper = min(upper, (B // 2) // sublane * sublane)
    cands = [t for t in range(sublane, upper + 1, sublane) if B % t == 0]
    if not cands:
        return B
    for align in (256, 128, sublane):
        aligned = [t for t in cands if t % align == 0]
        if aligned:
            return max(aligned)
    return max(cands)


def _choose_th(hidden: int, in_dim: int, out_dim: int, tb: int,
               w_isz: int, budget: int) -> int:
    """Hidden-chunk size. Full hidden if resident weights (+ the (tb,th) layer-1
    intermediate) fit the budget, else stream 256-aligned (then 128) chunks."""

    def vmem_needed(th, nbuf):
        weights = nbuf * ((in_dim + out_dim) * th * w_isz
                          + th * w_isz + out_dim * w_isz)       # w1,w2 chunks + biases
        h_bytes = tb * th * 4 + tb * th * w_isz                 # f32 h + cast copy
        return weights + h_bytes

    if vmem_needed(hidden, 1) <= budget:
        return hidden

    fallback = None
    for align in (256, 128):
        cands = sorted((t for t in range(align, hidden, align) if hidden % t == 0),
                       reverse=True)
        for th in cands:
            if vmem_needed(th, 2) <= budget:
                return th
        if cands and fallback is None:
            fallback = cands[-1]
    return fallback if fallback is not None else hidden


# ---------------------------------------------------------------------------
# Wrapper
# ---------------------------------------------------------------------------
def projection_mlp(x, w1, b1, w2, b2, *, tb=None, th=None, prefer_bf16=False):
    """Forward pass of projection_MLP.

    x : (B, in_dim)
    w1: (in_dim, hidden)   (transposed vs. PyTorch's (hidden, in_dim))
    b1: (hidden,) or (1, hidden)
    w2: (hidden, out_dim)
    b2: (out_dim,) or (1, out_dim)
    returns (B, out_dim) in x's original dtype.
    """
    out_dtype = x.dtype
    if prefer_bf16 and x.dtype == jnp.float32:
        # bf16 storage fast path (MXU-native); accumulation stays f32 in-kernel.
        x, w1, b1, w2, b2 = (a.astype(jnp.bfloat16) for a in (x, w1, b1, w2, b2))

    B, in_dim = x.shape
    hidden = w1.shape[1]
    out_dim = w2.shape[1]
    assert w1.shape == (in_dim, hidden) and w2.shape == (hidden, out_dim)
    b1 = b1.reshape(1, hidden)
    b2 = b2.reshape(1, out_dim)
    # TODO(synk): if a config ever uses out_dim < 128, pad it to 128 lanes here
    # to avoid masked partial stores on the output writeback.

    x_isz = x.dtype.itemsize
    w_isz = w1.dtype.itemsize
    b1_isz = b1.dtype.itemsize
    b2_isz = b2.dtype.itemsize
    sublane = _sublane_for(x.dtype)

    vmem_cap = _vmem_capacity_bytes()
    vmem_usable = min(int(vmem_cap * 0.8), 100 << 20)   # ~51 MiB on v7x, ~100 MiB on v5e/v6e

    def act_bytes(tb_):
        # double-buffered x / out tiles + f32 accumulator / partial result
        return (2 * tb_ * in_dim * x_isz + 2 * tb_ * out_dim * x_isz
                + 2 * tb_ * out_dim * 4)

    # --- batch tile, then hidden tile (re-pick tb larger if we end up streaming)
    tb_ = tb if tb is not None else _choose_tb(B, sublane, target=512)
    budget = max(8 << 20, vmem_usable - act_bytes(tb_) - (4 << 20))
    th_ = th if th is not None else _choose_th(hidden, in_dim, out_dim, tb_, w_isz, budget)
    if th is None and tb is None and th_ < hidden:
        # Streaming: raise the batch tile so each weight chunk amortizes more rows.
        tb_ = _choose_tb(B, sublane, target=1024)
        budget = max(8 << 20, vmem_usable - act_bytes(tb_) - (4 << 20))
        th_ = _choose_th(hidden, in_dim, out_dim, tb_, w_isz, budget)
    tb, th = tb_, th_

    assert B % tb == 0, "batch size must be divisible by the batch tile"
    assert tb == B or tb % sublane == 0, (
        f"tb={tb} must be a multiple of {sublane} for dtype {x.dtype} when tb < B")
    assert hidden % th == 0, "hidden dim must be divisible by the hidden tile"
    assert th == hidden or th % 128 == 0, "hidden tile must be a multiple of 128"

    nb, nk = B // tb, hidden // th

    # --- cost estimate (weights re-streamed once per batch tile when nk > 1) ---
    weight_bytes = (w1.size * w_isz + w2.size * w_isz
                    + b1.size * b1_isz + b2.size * b2_isz)
    weight_reads = nb if nk > 1 else 1
    cost = pl.CostEstimate(
        flops=int(2 * B * (in_dim * hidden + hidden * out_dim)),
        transcendentals=0,
        bytes_accessed=int(x.size * x_isz + weight_reads * weight_bytes
                           + B * out_dim * x_isz))

    def _build(use_single_buffer: bool):
        const_kw = ({"pipeline_mode": pl.Buffered(1)}
                    if (use_single_buffer and _HAS_PIPELINE_MODE) else {})

        if nk == 1:
            nbuf_w = 1 if const_kw else 2
            need = (2 * tb * in_dim * x_isz + 2 * tb * out_dim * x_isz
                    + nbuf_w * ((in_dim * hidden + hidden * out_dim) * w_isz
                                + hidden * b1_isz + out_dim * b2_isz)
                    + tb * hidden * 4 + tb * hidden * w_isz      # h (f32) + cast copy
                    + tb * out_dim * 4)                          # f32 layer-2 result
            in_specs = [
                pl.BlockSpec((tb, in_dim), lambda i: (i, 0)),
                pl.BlockSpec((in_dim, hidden), lambda i: (0, 0), **const_kw),
                pl.BlockSpec((1, hidden), lambda i: (0, 0), **const_kw),
                pl.BlockSpec((hidden, out_dim), lambda i: (0, 0), **const_kw),
                pl.BlockSpec((1, out_dim), lambda i: (0, 0), **const_kw),
            ]
            kernel = _mlp_kernel_fused
            grid = (nb,)
            out_specs = pl.BlockSpec((tb, out_dim), lambda i: (i, 0))
            scratch = []
            dims = ("parallel",)
        else:
            need = (2 * tb * in_dim * x_isz + 2 * tb * out_dim * x_isz
                    + 2 * ((in_dim * th + th * out_dim) * w_isz + th * b1_isz)
                    + out_dim * b2_isz
                    + tb * th * 4 + tb * th * w_isz              # h (f32) + cast copy
                    + 2 * tb * out_dim * 4)                      # partial + accumulator
            in_specs = [
                pl.BlockSpec((tb, in_dim), lambda i, k: (i, 0)),        # x resident over k
                pl.BlockSpec((in_dim, th), lambda i, k: (0, k)),        # w1 chunk (streamed)
                pl.BlockSpec((1, th), lambda i, k: (0, k)),             # b1 chunk
                pl.BlockSpec((th, out_dim), lambda i, k: (k, 0)),       # w2 chunk
                pl.BlockSpec((1, out_dim), lambda i, k: (0, 0), **const_kw),  # b2 constant
            ]
            kernel = _mlp_kernel_stream
            grid = (nb, nk)
            out_specs = pl.BlockSpec((tb, out_dim), lambda i, k: (i, 0))
            scratch = [pltpu.VMEM((tb, out_dim), jnp.float32)]
            dims = ("parallel", "arbitrary")

        vmem_limit = int(min(max(need * 5 // 4 + (1 << 20), 32 << 20), vmem_usable))

        return pl.pallas_call(
            kernel,
            out_shape=jax.ShapeDtypeStruct((B, out_dim), out_dtype),
            grid_spec=pltpu.PrefetchScalarGridSpec(
                num_scalar_prefetch=0,
                grid=grid,
                in_specs=in_specs,
                out_specs=out_specs,
                scratch_shapes=scratch,
            ),
            compiler_params=pltpu.CompilerParams(
                dimension_semantics=dims,
                vmem_limit_bytes=vmem_limit),
            cost_estimate=cost,
        )

    try:
        return _build(True)(x, w1, b1, w2, b2)
    except Exception as e:  # narrow fallback: only for pipeline_mode/Buffered issues
        msg = str(e)
        if _HAS_PIPELINE_MODE and ("pipeline_mode" in msg or "Buffered" in msg):
            return _build(False)(x, w1, b1, w2, b2)
        raise


def init_params(key, in_dim, out_dim=256, dtype=jnp.float32):
    """Init matching PyTorch nn.Linear default (uniform +-1/sqrt(fan_in)); hidden=in_dim."""
    hidden_dim = in_dim
    k1, k2, k3, k4 = jax.random.split(key, 4)
    bound1 = 1.0 / math.sqrt(in_dim)
    bound2 = 1.0 / math.sqrt(hidden_dim)
    # Stored already transposed to (fan_in, fan_out) for the kernel.
    w1 = jax.random.uniform(k1, (in_dim, hidden_dim), dtype, -bound1, bound1)
    b1 = jax.random.uniform(k2, (1, hidden_dim), dtype, -bound1, bound1)
    w2 = jax.random.uniform(k3, (hidden_dim, out_dim), dtype, -bound2, bound2)
    b2 = jax.random.uniform(k4, (1, out_dim), dtype, -bound2, bound2)
    return w1, b1, w2, b2


if __name__ == "__main__":
    key = jax.random.PRNGKey(0)

    # ---- f32 resident-weights (fused) path: exact check vs pure-JAX reference.
    B, in_dim, out_dim = 8, 128, 256
    kx, kp, kx2, kp2 = jax.random.split(key, 4)
    x = jax.random.normal(kx, (B, in_dim), jnp.float32)
    w1, b1, w2, b2 = init_params(kp, in_dim, out_dim)

    out = jax.block_until_ready(projection_mlp(x, w1, b1, w2, b2))
    ref = jnp.maximum(x @ w1 + b1, 0.0) @ w2 + b2
    assert out.shape == (B, out_dim)
    assert jnp.allclose(out, ref, atol=1e-5, rtol=1e-5), "f32 fused mismatch vs reference"

    # ---- streaming (nk > 1) accumulator path: force th < hidden.
    B2, in_dim2 = 16, 256
    x2 = jax.random.normal(kx2, (B2, in_dim2), jnp.float32)
    w1s, b1s, w2s, b2s = init_params(kp2, in_dim2, out_dim)
    out_s = jax.block_until_ready(projection_mlp(x2, w1s, b1s, w2s, b2s, th=128))
    ref_s = jnp.maximum(x2 @ w1s + b1s, 0.0) @ w2s + b2s
    assert out_s.shape == (B2, out_dim)
    assert jnp.allclose(out_s, ref_s, atol=1e-4, rtol=1e-4), "f32 streaming mismatch vs reference"

    # ---- bf16 storage fast path (recommended on v5e/v6e): cast in the wrapper,
    # kernel still accumulates in f32; output returned in the original f32 dtype.
    out_bf = jax.block_until_ready(projection_mlp(x, w1, b1, w2, b2, prefer_bf16=True))
    xb, w1b, b1b, w2b, b2b = (a.astype(jnp.bfloat16).astype(jnp.float32)
                              for a in (x, w1, b1, w2, b2))
    ref_bf = jnp.maximum(xb @ w1b + b1b, 0.0) @ w2b + b2b
    assert out_bf.shape == (B, out_dim) and out_bf.dtype == x.dtype
    assert jnp.allclose(out_bf, ref_bf, atol=0.1, rtol=0.05), "bf16 mismatch vs reference"

    print("KERNEL_OK")
</pallas_src>

<mosaic_0001>
module attributes {stable_mosaic.version = 11 : i64} {
  func.func @_mlp_kernel_fused(%arg0: i32, %arg1: memref<8x128xf32, #tpu.memory_space<vmem>>, %arg2: memref<128x128xf32, #tpu.memory_space<vmem>>, %arg3: memref<1x128xf32, #tpu.memory_space<vmem>>, %arg4: memref<128x256xf32, #tpu.memory_space<vmem>>, %arg5: memref<1x256xf32, #tpu.memory_space<vmem>>, %arg6: memref<8x256xf32, #tpu.memory_space<vmem>>) attributes {dimension_semantics = [#tpu.dimension_semantics<parallel>], iteration_bounds = array<i64: 1>, scalar_prefetch = 0 : i64, scratch_operands = 0 : i64, tpu.core_type = #tpu.core_type<tc>, window_params = [{transform_indices = @transform_0, window_bounds = array<i64: 8, 128>}, {pipeline_mode = #tpu.pipeline_mode<synchronous>, transform_indices = @transform_1, window_bounds = array<i64: 128, 128>}, {pipeline_mode = #tpu.pipeline_mode<synchronous>, transform_indices = @transform_2, window_bounds = array<i64: 1, 128>}, {pipeline_mode = #tpu.pipeline_mode<synchronous>, transform_indices = @transform_3, window_bounds = array<i64: 128, 256>}, {pipeline_mode = #tpu.pipeline_mode<synchronous>, transform_indices = @transform_4, window_bounds = array<i64: 1, 256>}, {transform_indices = @transform_5, window_bounds = array<i64: 8, 256>}]} {
    %c0 = arith.constant 0 : index
    %c0_0 = arith.constant 0 : index
    %0 = vector.load %arg1[%c0, %c0_0] : memref<8x128xf32, #tpu.memory_space<vmem>>, vector<8x128xf32>
    %c0_1 = arith.constant 0 : index
    %c0_2 = arith.constant 0 : index
    %1 = vector.load %arg2[%c0_1, %c0_2] : memref<128x128xf32, #tpu.memory_space<vmem>>, vector<128x128xf32>
    %cst = arith.constant dense<0.000000e+00> : vector<8x128xf32>
    %2 = tpu.matmul %0, %1, %cst {dimension_numbers = #tpu.dot_dimension_numbers<[1], [0], [0], [1], [0, 0, 1, 1], [], []>} : vector<8x128xf32>, vector<128x128xf32>, vector<8x128xf32> -> vector<8x128xf32>
    %c0_3 = arith.constant 0 : index
    %c0_4 = arith.constant 0 : index
    %3 = vector.load %arg3[%c0_3, %c0_4] : memref<1x128xf32, #tpu.memory_space<vmem>>, vector<1x128xf32>
    %4 = vector.broadcast %3 : vector<1x128xf32> to vector<8x128xf32>
    %5 = arith.addf %2, %4 : vector<8x128xf32>
    %cst_5 = arith.constant 0.000000e+00 : f32
    %6 = vector.broadcast %cst_5 : f32 to vector<8x128xf32>
    %7 = arith.maximumf %5, %6 : vector<8x128xf32>
    %c0_6 = arith.constant 0 : index
    %c0_7 = arith.constant 0 : index
    %8 = vector.load %arg4[%c0_6, %c0_7] : memref<128x256xf32, #tpu.memory_space<vmem>>, vector<128x256xf32>
    %cst_8 = arith.constant dense<0.000000e+00> : vector<8x256xf32>
    %9 = tpu.matmul %7, %8, %cst_8 {dimension_numbers = #tpu.dot_dimension_numbers<[1], [0], [0], [1], [0, 0, 1, 1], [], []>} : vector<8x128xf32>, vector<128x256xf32>, vector<8x256xf32> -> vector<8x256xf32>
    %c0_9 = arith.constant 0 : index
    %c0_10 = arith.constant 0 : index
    %10 = vector.load %arg5[%c0_9, %c0_10] : memref<1x256xf32, #tpu.memory_space<vmem>>, vector<1x256xf32>
    %11 = vector.broadcast %10 : vector<1x256xf32> to vector<8x256xf32>
    %12 = arith.addf %9, %11 : vector<8x256xf32>
    %c0_11 = arith.constant 0 : index
    %c0_12 = arith.constant 0 : index
    %13 = vector.load %arg6[%c0_11, %c0_12] : memref<8x256xf32, #tpu.memory_space<vmem>>, vector<8x256xf32>
    tpu.vector_store %arg6[%c0_11, %c0_12], %12 {strides = array<i32>} : memref<8x256xf32, #tpu.memory_space<vmem>>, vector<8x256xf32>,
    return
  }
  func.func @transform_0(%arg0: i32) -> (i32, i32) {
    %c0_i32 = arith.constant 0 : i32
    %c0_i32_0 = arith.constant 0 : i32
    return %arg0, %c0_i32 : i32, i32
  }
  func.func @transform_1(%arg0: i32) -> (i32, i32) {
    %c0_i32 = arith.constant 0 : i32
    %c0_i32_0 = arith.constant 0 : i32
    %c0_i32_1 = arith.constant 0 : i32
    return %c0_i32, %c0_i32_0 : i32, i32
  }
  func.func @transform_2(%arg0: i32) -> (i32, i32) {
    %c0_i32 = arith.constant 0 : i32
    %c0_i32_0 = arith.constant 0 : i32
    %c0_i32_1 = arith.constant 0 : i32
    return %c0_i32, %c0_i32_0 : i32, i32
  }
  func.func @transform_3(%arg0: i32) -> (i32, i32) {
    %c0_i32 = arith.constant 0 : i32
    %c0_i32_0 = arith.constant 0 : i32
    %c0_i32_1 = arith.constant 0 : i32
    return %c0_i32, %c0_i32_0 : i32, i32
  }
  func.func @transform_4(%arg0: i32) -> (i32, i32) {
    %c0_i32 = arith.constant 0 : i32
    %c0_i32_0 = arith.constant 0 : i32
    %c0_i32_1 = arith.constant 0 : i32
    return %c0_i32, %c0_i32_0 : i32, i32
  }
  func.func @transform_5(%arg0: i32) -> (i32, i32) {
    %c0_i32 = arith.constant 0 : i32
    %c0_i32_0 = arith.constant 0 : i32
    return %arg0, %c0_i32 : i32, i32
  }
}

</mosaic_0001>

<bundles_post_ra>
// kernel: tpu_custom_call.1
= control target key start
LH: loop header
LB: loop body
LE: loop exit
PB: predicated region body
PF: predicated region fallthrough
CT: control target
= control target key end

     0   :  { %10 = vsyncpa [#allocation3], 0  ;;  %s373_s0 = inlined_call_operand.hbm [shape: f32[8,128], index: 0, kind: input, shape index: {}]   ;;  %s374_s1 = inlined_call_operand.hbm [shape: f32[128,128], index: 1, kind: input, shape index: {}]   ;;  %s375_s2 = inlined_call_operand.vmem [shape: f32[1,128], index: 2, kind: input, shape index: {}]   ;;  %s376_s3 = inlined_call_operand.hbm [shape: f32[128,256], index: 3, kind: input, shape index: {}]   ;;  %s377_s4 = inlined_call_operand.vmem [shape: f32[1,256], index: 4, kind: input, shape index: {}]   ;;  %s378_s5 = inlined_call_operand.hbm [shape: f32[8,256], index: 5, kind: output, shape index: {}]  }
   0x1   :  { %11 = vsyncpa [#allocation6], 0  ;;  %s28_s20 = sshll.u32 %s374_s1, 4  ;;  %s29_s20 = int_to_ptr.hbm [resolvable:$true] %s28_s20 }
   0x2   :  { %12 = vsyncpa [#allocation4], 0  ;;  %s317_s21 = smov [#allocation5]   ;;  %s18_s25 = sshll.u32 %s373_s0, 4  ;;  %s19_s25 = int_to_ptr.hbm [resolvable:$true] %s18_s25 }
   0x3   :  { %s30_s22 = sshll.u32 %s317_s21, 4  ;;  %s318_s26 = smov 128   ;;  %s31_s22 = int_to_ptr.vmem [resolvable:$true] %s30_s22 }
   0x4   :  { %s319_s27 = smov 8   ;;  %s320_s28 = smov [#allocation2]  }
   0x5   :  { %36 = dma.hbm_to_vmem [thread:$0]  %s29_s20, 2048, %s31_s22, [#allocation6], %s318_s26, %s318_s26, %s319_s27  }
   0x6   :  { %s20_s29 = sshll.u32 %s320_s28, 4  ;;  %s43_s7 = sshll.u32 %s376_s3, 4  ;;  %s21_s29 = int_to_ptr.vmem [resolvable:$true] %s20_s29  ;;  %s44_s7 = int_to_ptr.hbm [resolvable:$true] %s43_s7 }
   0x7   :  { %23 = dma.hbm_to_vmem [thread:$0]  %s19_s25, 128, %s21_s29, [#allocation3]  }
   0x8   :  { %s321_s1 = smov [#allocation7]   ;;  %s322_s9 = smov 256  }
   0x9   :  { %s45_s8 = sshll.u32 %s321_s1, 4  ;;  %s323_s10 = smov 16   ;;  %s46_s8 = int_to_ptr.vmem [resolvable:$true] %s45_s8 }
   0xa   :  { %51 = dma.hbm_to_vmem [thread:$0]  %s44_s7, 4096, %s46_s8, [#allocation6], %s322_s9, %s322_s9, %s323_s10  }
   0xb   :  { %311 = dma.done.wait [#allocation3], 128  }
   0xc   :  { %312 = vsyncadd [#allocation3], 4294967168 }
   0xd   :  { %313 = dma.done.wait [#allocation6], 6144  }
   0xe   :  { %314 = vsyncadd [#allocation6], 4294961152  ;;  %v82_v0 = vld [vmem:[#allocation5 + $0x78] sm:$0xff]  ;;  %v81_v1 = vld [vmem:[#allocation5 + $0x70] sm:$0xff]  ;;  %s324_s13 = smov [#allocation8]  }
   0xf   :  { %87 = vmatpush.msra.mxu0 %v82_v0  ;;  %v80_v2 = vld [vmem:[#allocation5 + $0x68] sm:$0xff]  ;;  %v79_v3 = vld [vmem:[#allocation5 + $0x60] sm:$0xff]  ;;  %v78_v4 = vld [vmem:[#allocation5 + $0x58] sm:$0xff]  ;;  %s193_s14 = sshll.u32 %s324_s13, 4  ;;  %s194_s14 = int_to_ptr.vmem [resolvable:$true] %s193_s14 }
  0x10   :  { %v138_v5 = vld [vmem:[#allocation7 + $0xf0] sm:$0xff]  ;;  %v139_v6 = vld [vmem:[#allocation7 + $0xf8] sm:$0xff]  ;;  %v136_v7 = vld [vmem:[#allocation7 + $0xe0] sm:$0xff] }
  0x11   :  { %88 = vmatpush.msra.mxu0 %v81_v1  ;;  %146 = vmatpush.msra.mxu1 %v138_v5  ;;  %v137_v8 = vld [vmem:[#allocation7 + $0xe8] sm:$0xff]  ;;  %v134_v9 = vld [vmem:[#allocation7 + $0xd0] sm:$0xff]  ;;  %v135_v11 = vld [vmem:[#allocation7 + $0xd8] sm:$0xff] }
  0x12   :  { %166 = vmatpush.msra.mxu2 %v139_v6  ;;  %v77_v10 = vld [vmem:[#allocation5 + $0x50] sm:$0xff]  ;;  %v132_v12 = vld [vmem:[#allocation7 + $0xc0] sm:$0xff]  ;;  %v76_v13 = vld [vmem:[#allocation5 + $0x48] sm:$0xff] }
  0x13   :  { %89 = vmatpush.msra.mxu0 %v80_v2  ;;  %147 = vmatpush.msra.mxu1 %v136_v7  ;;  %v133_v14 = vld [vmem:[#allocation7 + $0xc8] sm:$0xff]  ;;  %v130_v15 = vld [vmem:[#allocation7 + $0xb0] sm:$0xff]  ;;  %v75_v16 = vld [vmem:[#allocation5 + $0x40] sm:$0xff] }
  0x14   :  { %167 = vmatpush.msra.mxu2 %v137_v8  ;;  %v131_v17 = vld [vmem:[#allocation7 + $0xb8] sm:$0xff]  ;;  %v128_v18 = vld [vmem:[#allocation7 + $0xa0] sm:$0xff]  ;;  %v129_v20 = vld [vmem:[#allocation7 + $0xa8] sm:$0xff] }
  0x15   :  { %90 = vmatpush.msra.mxu0 %v79_v3  ;;  %148 = vmatpush.msra.mxu1 %v134_v9  ;;  %v74_v19 = vld [vmem:[#allocation5 + $0x38] sm:$0xff]  ;;  %v126_v21 = vld [vmem:[#allocation7 + $0x90] sm:$0xff]  ;;  %v124_v24 = vld [vmem:[#allocation7 + $0x80] sm:$0xff] }
  0x16   :  { %168 = vmatpush.msra.mxu2 %v135_v11  ;;  %v73_v22 = vld [vmem:[#allocation5 + $0x30] sm:$0xff]  ;;  %v127_v23 = vld [vmem:[#allocation7 + $0x98] sm:$0xff]  ;;  %v72_v25 = vld [vmem:[#allocation5 + $0x28] sm:$0xff] }
  0x17   :  { %91 = vmatpush.msra.mxu0 %v78_v4  ;;  %149 = vmatpush.msra.mxu1 %v132_v12  ;;  %v125_v26 = vld [vmem:[#allocation7 + $0x88] sm:$0xff]  ;;  %v122_v27 = vld [vmem:[#allocation7 + $0x70] sm:$0xff]  ;;  %v71_v28 = vld [vmem:[#allocation5 + $0x20] sm:$0xff] }
  0x18   :  { %169 = vmatpush.msra.mxu2 %v133_v14  ;;  %v123_v29 = vld [vmem:[#allocation7 + $0x78] sm:$0xff]  ;;  %v120_v30 = vld [vmem:[#allocation7 + $0x60] sm:$0xff]  ;;  %v121_v32 = vld [vmem:[#allocation7 + $0x68] sm:$0xff] }
  0x19   :  { %92 = vmatpush.msra.mxu0 %v77_v10  ;;  %150 = vmatpush.msra.mxu1 %v130_v15  ;;  %v70_v31 = vld [vmem:[#allocation5 + $0x18] sm:$0xff]  ;;  %v118_v33 = vld [vmem:[#allocation7 + $0x50] sm:$0xff]  ;;  %v116_v36 = vld [vmem:[#allocation7 + $0x40] sm:$0xff] }
  0x1a   :  { %170 = vmatpush.msra.mxu2 %v131_v17  ;;  %v69_v34 = vld [vmem:[#allocation5 + $0x10] sm:$0xff]  ;;  %v119_v35 = vld [vmem:[#allocation7 + $0x58] sm:$0xff]  ;;  %v68_v37 = vld [vmem:[#allocation5 + $0x8] sm:$0xff] }
  0x1b   :  { %93 = vmatpush.msra.mxu0 %v76_v13  ;;  %151 = vmatpush.msra.mxu1 %v128_v18  ;;  %v117_v38 = vld [vmem:[#allocation7 + $0x48] sm:$0xff]  ;;  %v114_v39 = vld [vmem:[#allocation7 + $0x30] sm:$0xff]  ;;  %v67_v40 = vld [vmem:[#allocation5] sm:$0xff] }
  0x1c   :  { %171 = vmatpush.msra.mxu2 %v129_v20  ;;  %v115_v41 = vld [vmem:[#allocation7 + $0x38] sm:$0xff]  ;;  %v112_v43 = vld [vmem:[#allocation7 + $0x20] sm:$0xff]  ;;  %v113_v44 = vld [vmem:[#allocation7 + $0x28] sm:$0xff] }
  0x1d   :  { %94 = vmatpush.msra.mxu0 %v75_v16  ;;  %152 = vmatpush.msra.mxu1 %v126_v21  ;;  %v66_v42 = vld [vmem:[#allocation2] sm:$0xff]  ;;  %v110_v45 = vld [vmem:[#allocation7 + $0x10] sm:$0xff]  ;;  %v108_v47 = vld [vmem:[#allocation7] sm:$0xff] }
  0x1e   :  { %172 = vmatpush.msra.mxu2 %v127_v23  ;;  %v111_v46 = vld [vmem:[#allocation7 + $0x18] sm:$0xff]  ;;  %v109_v48 = vld [vmem:[#allocation7 + $0x8] sm:$0xff] }
  0x1f   :  { %95 = vmatpush.msra.mxu0 %v74_v19  ;;  %153 = vmatpush.msra.mxu1 %v124_v24  ;;  %v214_v49 = vld [vmem:[%s375_s2] ss:$0 sm:$0xff]  ;;  %s195_s2 = sshll.u32 %s378_s5, 4  ;;  %s196_s2 = int_to_ptr.hbm [resolvable:$true] %s195_s2 }
  0x20   :  { %173 = vmatpush.msra.mxu2 %v125_v26  ;;  %v140_v53 = vld [vmem:[%s377_s4] sm:$0x3] }
  0x21   :  { %96 = vmatpush.msra.mxu0 %v73_v22  ;;  %154 = vmatpush.msra.mxu1 %v122_v27  ;;  %v142_v54 = vperm.slane %v140_v53, 0  ;;  %v143_v57 = vperm.slane %v140_v53, 1 }
  0x22   :  { %174 = vmatpush.msra.mxu2 %v123_v29 }
  0x23   :  { %97 = vmatpush.msra.mxu0 %v72_v25  ;;  %155 = vmatpush.msra.mxu1 %v120_v30 }
  0x24   :  { %175 = vmatpush.msra.mxu2 %v121_v32 }
  0x25   :  { %98 = vmatpush.msra.mxu0 %v71_v28  ;;  %156 = vmatpush.msra.mxu1 %v118_v33 }
  0x26   :  { %176 = vmatpush.msra.mxu2 %v119_v35 }
  0x27   :  { %99 = vmatpush.msra.mxu0 %v70_v31  ;;  %157 = vmatpush.msra.mxu1 %v116_v36 }
  0x28   :  { %177 = vmatpush.msra.mxu2 %v117_v38 }
  0x29   :  { %100 = vmatpush.msra.mxu0 %v69_v34  ;;  %158 = vmatpush.msra.mxu1 %v114_v39 }
  0x2a   :  { %178 = vmatpush.msra.mxu2 %v115_v41 }
  0x2b   :  { %101 = vmatpush.msra.mxu0 %v68_v37  ;;  %159 = vmatpush.msra.mxu1 %v112_v43 }
  0x2c   :  { %179 = vmatpush.msra.mxu2 %v113_v44 }
  0x2d   :  { %102 = vmatpush.msra.mxu0 %v67_v40  ;;  %160 = vmatpush.msra.mxu1 %v110_v45 }
  0x2e   :  { %103 = vmatmul.f32.vlgmr.msra.gmra.mxu0 %v66_v42  ;;  %180 = vmatpush.msra.mxu2 %v111_v46 }
  0x2f   :  { %161 = vmatpush.msra.mxu1 %v108_v47 }
  0x30   :  { %181 = vmatpush.msra.mxu2 %v109_v48 }
  0xab   :  { %v104_v50 = vpop.f32.mrf.mxu0 }
  0xac   :  { %v105_v51 = vadd.f32 %v214_v49, %v104_v50 }
  0xae   :  { %v107_v52 = vmax.f32 %v105_v51, 0.0 }
  0xb0   :  { %162 = vmatmul.f32.vlgmr.msra.gmra.mxu1 %v107_v52  ;;  %182 = vmatmul.f32.vlgmr.msra.gmra.mxu2 %v107_v52 }
 0x12d   :  { %v163_v55 = vpop.f32.mrf.mxu1 }
 0x12e   :  { %v164_v56 = vadd.f32 %v163_v55, %v142_v54 }
 0x130   :  { %186 = vst [vmem:[#allocation8] sm:$0xff] %v164_v56 }
 0x133   :  { %v183_v58 = vpop.f32.mrf.mxu2 }
 0x134   :  { %v184_v59 = vadd.f32 %v183_v58, %v143_v57 }
 0x136   :  { %187 = vst [vmem:[#allocation8 + $0x8] sm:$0xff] %v184_v59 }
 0x137   :  { %198 = dma.vmem_to_hbm [thread:$0]  %s194_s14, 256, %s196_s2, [#allocation4]  }
 0x138   :  { %315 = dma.done.wait [#allocation4], 256  }
 0x139   :  { %316 = vsyncadd [#allocation4], 4294967040 }
 0x13a   :  { %203 = vsyncpa [#allocation3], 1 }
 0x13b   :  { %204 = vsyncpa [#allocation6], 1 }
 0x13c   :  { %205 = vsyncpa [#allocation4], 1 }

</bundles_post_ra>
